<compile_context>
chip_gen: v7x
topology: tpu7x:2x2x1
jax: 0.10.0
libtpu: 0.0.40
codegen_flags: <defaults>
</compile_context>

<pallas_src>
import functools

import jax
import jax.numpy as jnp
from jax import lax
from jax.experimental import pallas as pl
from jax.experimental.pallas import tpu as pltpu

BN_EPS = 1e-5
LANE = 128


def _round_up(a, b):
    return (a + b - 1) // b * b


# ----------------------------------------------------------------------------
# Stage 1: tiled global average pool  (B, C, H*W) -> (B, C)
# ----------------------------------------------------------------------------
def _pool_kernel(x_ref, o_ref, acc_ref, *, inv_spatial):
    s_idx = pl.program_id(1)

    @pl.when(s_idx == 0)
    def _init():
        acc_ref[...] = jnp.zeros_like(acc_ref)

    x = x_ref[...].astype(jnp.float32)                 # (B, c_blk, s_blk)
    s_blk = x.shape[-1]
    n_chunks = s_blk // LANE
    # Lane-parallel accumulation: fold the 128-wide lane columns with plain
    # VALU adds (128-aligned lane slices = cheap vreg selection, no relayout);
    # defer the single cross-lane (XLU) reduce to the epilogue.
    partial = x[:, :, 0:LANE]
    for m in range(1, n_chunks):
        partial = partial + x[:, :, m * LANE:(m + 1) * LANE]
    acc_ref[...] += partial                            # one accumulator store / tile

    @pl.when(s_idx == pl.num_programs(1) - 1)
    def _finalize():
        pooled = jnp.sum(acc_ref[...], axis=-1) * inv_spatial   # (B, c_blk)
        o_ref[...] = pooled.astype(o_ref.dtype)


def global_avg_pool(x_nchw, *, s_tile=2048, vmem_tile_bytes=2 * 1024 * 1024):
    """Global average pool of an NCHW tensor -> (B, C) float32."""
    B, C, H, W = x_nchw.shape
    S = H * W
    x = x_nchw.reshape(B, C, S)

    # Channel tiling: second-to-last block dim is a multiple of 8 (or the whole
    # padded channel extent); 128-wide channel blocks once C exceeds one lane.
    if C <= LANE:
        c_blk = _round_up(C, 8)
        c_pad = c_blk
    else:
        c_blk = LANE
        c_pad = _round_up(C, LANE)

    # Spatial tiling: a large multiple of 128, sized so each (double-buffered)
    # x tile stays within a modest VMEM budget (safe for v7x's 64 MiB VMEM).
    itemsize = jnp.dtype(x.dtype).itemsize
    bytes_per_lane_col = B * c_blk * LANE * itemsize
    s_budget = max(LANE, (vmem_tile_bytes // bytes_per_lane_col) * LANE)
    s_blk = min(_round_up(S, LANE), s_budget, _round_up(s_tile, LANE))
    s_pad = _round_up(S, s_blk)

    if c_pad != C or s_pad != S:
        # Zero padding is exact: zeros don't change the sum, we divide by the
        # true H*W, and padded channels are sliced off below.
        x = jnp.pad(x, ((0, 0), (0, c_pad - C), (0, s_pad - S)))

    grid = (c_pad // c_blk, s_pad // s_blk)

    pooled_pad = pl.pallas_call(
        functools.partial(_pool_kernel, inv_spatial=1.0 / float(S)),
        out_shape=jax.ShapeDtypeStruct((B, c_pad), jnp.float32),
        grid_spec=pltpu.PrefetchScalarGridSpec(
            num_scalar_prefetch=0,
            grid=grid,
            in_specs=[pl.BlockSpec((B, c_blk, s_blk), lambda c, s: (0, c, s))],
            out_specs=pl.BlockSpec((B, c_blk), lambda c, s: (0, c)),
            scratch_shapes=[pltpu.VMEM((B, c_blk, LANE), jnp.float32)],
        ),
        compiler_params=pltpu.CompilerParams(
            dimension_semantics=("parallel", "arbitrary")),
    )(x)
    return pooled_pad[:, :C]


# ----------------------------------------------------------------------------
# Stage 2: Linear -> Linear -> BatchNorm (training-mode batch stats) on (B, C)
# ----------------------------------------------------------------------------
def _fc_bn_kernel(p_ref, w1_ref, b1_ref, w2_ref, b2_ref, g_ref, be_ref, o_ref):
    pooled = p_ref[...].astype(jnp.float32)                              # (B, C)
    h = jnp.dot(pooled, w1_ref[...],
                preferred_element_type=jnp.float32) + b1_ref[...]        # (B, Ch)
    out = jnp.dot(h, w2_ref[...],
                  preferred_element_type=jnp.float32) + b2_ref[...]      # (B, C)
    # BatchNorm2d on (B, C, 1, 1), training mode: per-channel mean and biased
    # variance over the batch dim.  (With B == 1 the variance is exactly 0 and
    # the output collapses to beta — this matches PyTorch.)
    mean = jnp.mean(out, axis=0, keepdims=True)
    var = jnp.mean((out - mean) ** 2, axis=0, keepdims=True)
    norm = (out - mean) * lax.rsqrt(var + BN_EPS)
    o_ref[...] = (norm * g_ref[...] + be_ref[...]).astype(o_ref.dtype)


def channel_attention(x_nchw, w1, b1, w2, b2, gamma, beta, *, s_tile=2048):
    """x_nchw: (B, C, H, W). Returns (B, C, 1, 1) float32."""
    B, C, H, W = x_nchw.shape
    pooled = global_avg_pool(x_nchw, s_tile=s_tile)          # (B, C) f32

    vmem = pl.BlockSpec(memory_space=pltpu.MemorySpace.VMEM)
    out = pl.pallas_call(
        _fc_bn_kernel,
        out_shape=jax.ShapeDtypeStruct((B, C), jnp.float32),
        in_specs=[vmem] * 7,
        out_specs=vmem,
    )(pooled, w1, b1, w2, b2, gamma, beta)
    # TODO(synk): PyTorch training-mode BN also updates running_mean/var buffers
    # as a side effect; that state update is not emitted (forward output is
    # unaffected).
    return out.reshape(B, C, 1, 1)


def reference(x_nchw, w1, b1, w2, b2, gamma, beta):
    """Pure-JAX reference mirroring the PyTorch forward (training-mode BN)."""
    pooled = jnp.mean(x_nchw, axis=(2, 3))                   # (B, C)
    h = pooled @ w1 + b1
    out = h @ w2 + b2
    mean = jnp.mean(out, axis=0, keepdims=True)
    var = jnp.mean((out - mean) ** 2, axis=0, keepdims=True)
    norm = (out - mean) / jnp.sqrt(var + BN_EPS)
    out = norm * gamma + beta
    return out.reshape(*out.shape, 1, 1)


if __name__ == "__main__":
    # Module hyper-parameters (small shapes; s_tile=128 forces a 2-step
    # spatial grid so the accumulate/epilogue path is exercised).
    B, C, H, W = 2, 16, 16, 16
    reduction = 4
    Ch = C // reduction

    key = jax.random.PRNGKey(0)
    kx, k1, k2, k3, k4, k5, k6 = jax.random.split(key, 7)

    x = jax.random.normal(kx, (B, C, H, W), dtype=jnp.float32)
    w1 = jax.random.normal(k1, (C, Ch), dtype=jnp.float32) * 0.1   # l1.weight^T
    b1 = jax.random.normal(k2, (1, Ch), dtype=jnp.float32) * 0.1   # l1.bias
    w2 = jax.random.normal(k3, (Ch, C), dtype=jnp.float32) * 0.1   # l2.weight^T
    b2 = jax.random.normal(k4, (1, C), dtype=jnp.float32) * 0.1    # l2.bias
    gamma = 1.0 + 0.1 * jax.random.normal(k5, (1, C), dtype=jnp.float32)  # bn.weight
    beta = 0.1 * jax.random.normal(k6, (1, C), dtype=jnp.float32)         # bn.bias

    out = channel_attention(x, w1, b1, w2, b2, gamma, beta, s_tile=128)
    out = jax.block_until_ready(out)

    ref = reference(x, w1, b1, w2, b2, gamma, beta)
    assert out.shape == (B, C, 1, 1)
    assert jnp.allclose(out, ref, atol=1e-4, rtol=1e-4), (
        f"max err {jnp.max(jnp.abs(out - ref))}")
    print("KERNEL_OK")
</pallas_src>

<mosaic_0001>
module attributes {stable_mosaic.version = 11 : i64} {
  func.func @_pool_kernel(%arg0: i32, %arg1: i32, %arg2: memref<2x16x128xf32, #tpu.memory_space<vmem>>, %arg3: memref<2x16xf32, #tpu.memory_space<vmem>>, %arg4: memref<2x16x128xf32, #tpu.memory_space<vmem>>) attributes {dimension_semantics = [#tpu.dimension_semantics<parallel>, #tpu.dimension_semantics<arbitrary>], iteration_bounds = array<i64: 1, 2>, scalar_prefetch = 0 : i64, scratch_operands = 1 : i64, tpu.core_type = #tpu.core_type<tc>, window_params = [{transform_indices = @transform_0, window_bounds = array<i64: 2, 16, 128>}, {transform_indices = @transform_1, window_bounds = array<i64: 2, 16>}]} {
    %c0_i32 = arith.constant 0 : i32
    %0 = arith.cmpi eq, %arg1, %c0_i32 : i32
    %1 = arith.extui %0 : i1 to i32
    %c0_i32_0 = arith.constant 0 : i32
    %2 = arith.cmpi ne, %1, %c0_i32_0 : i32
    scf.if %2 {
      %cst = arith.constant 0.000000e+00 : f32
      %10 = vector.broadcast %cst : f32 to vector<2x16x128xf32>
      %c0_10 = arith.constant 0 : index
      %c0_11 = arith.constant 0 : index
      %c0_12 = arith.constant 0 : index
      %11 = vector.load %arg4[%c0_10, %c0_11, %c0_12] : memref<2x16x128xf32, #tpu.memory_space<vmem>>, vector<2x16x128xf32>
      tpu.vector_store %arg4[%c0_10, %c0_11, %c0_12], %10 {strides = array<i32>} : memref<2x16x128xf32, #tpu.memory_space<vmem>>, vector<2x16x128xf32>,
    } else {
    }
    %c0 = arith.constant 0 : index
    %c0_1 = arith.constant 0 : index
    %c0_2 = arith.constant 0 : index
    %3 = vector.load %arg2[%c0, %c0_1, %c0_2] : memref<2x16x128xf32, #tpu.memory_space<vmem>>, vector<2x16x128xf32>
    %c0_3 = arith.constant 0 : index
    %c0_4 = arith.constant 0 : index
    %c0_5 = arith.constant 0 : index
    %4 = vector.load %arg4[%c0_3, %c0_4, %c0_5] : memref<2x16x128xf32, #tpu.memory_space<vmem>>, vector<2x16x128xf32>
    %5 = arith.addf %4, %3 : vector<2x16x128xf32>
    %c0_6 = arith.constant 0 : index
    %c0_7 = arith.constant 0 : index
    %c0_8 = arith.constant 0 : index
    %6 = vector.load %arg4[%c0_6, %c0_7, %c0_8] : memref<2x16x128xf32, #tpu.memory_space<vmem>>, vector<2x16x128xf32>
    tpu.vector_store %arg4[%c0_6, %c0_7, %c0_8], %5 {strides = array<i32>} : memref<2x16x128xf32, #tpu.memory_space<vmem>>, vector<2x16x128xf32>,
    %c1_i32 = arith.constant 1 : i32
    %7 = arith.cmpi eq, %arg1, %c1_i32 : i32
    %8 = arith.extui %7 : i1 to i32
    %c0_i32_9 = arith.constant 0 : i32
    %9 = arith.cmpi ne, %8, %c0_i32_9 : i32
    scf.if %9 {
      %c0_10 = arith.constant 0 : index
      %c0_11 = arith.constant 0 : index
      %c0_12 = arith.constant 0 : index
      %10 = vector.load %arg4[%c0_10, %c0_11, %c0_12] : memref<2x16x128xf32, #tpu.memory_space<vmem>>, vector<2x16x128xf32>
      %cst = arith.constant dense<0.000000e+00> : vector<2x16xf32>
      %11 = vector.multi_reduction <add>, %10, %cst [2] : vector<2x16x128xf32> to vector<2x16xf32>
      %cst_13 = arith.constant 3.906250e-03 : f32
      %12 = vector.broadcast %cst_13 : f32 to vector<2x16xf32>
      %13 = arith.mulf %11, %12 : vector<2x16xf32>
      %c0_14 = arith.constant 0 : index
      %c0_15 = arith.constant 0 : index
      %14 = vector.load %arg3[%c0_14, %c0_15] : memref<2x16xf32, #tpu.memory_space<vmem>>, vector<2x16xf32>
      tpu.vector_store %arg3[%c0_14, %c0_15], %13 {strides = array<i32>} : memref<2x16xf32, #tpu.memory_space<vmem>>, vector<2x16xf32>,
    } else {
    }
    return
  }
  func.func @transform_0(%arg0: i32, %arg1: i32) -> (i32, i32, i32) {
    %c0_i32 = arith.constant 0 : i32
    %c0_i32_0 = arith.constant 0 : i32
    return %c0_i32, %arg0, %arg1 : i32, i32, i32
  }
  func.func @transform_1(%arg0: i32, %arg1: i32) -> (i32, i32) {
    %c0_i32 = arith.constant 0 : i32
    %c0_i32_0 = arith.constant 0 : i32
    return %c0_i32, %arg0 : i32, i32
  }
}

</mosaic_0001>

<bundles_post_ra>
// kernel: tpu_custom_call.1
= control target key start
LH: loop header
LB: loop body
LE: loop exit
PB: predicated region body
PF: predicated region fallthrough
CT: control target
= control target key end

     0   :  { %6 = vsyncpa [#allocation4], 0  ;;  %s652_s0 = inlined_call_operand.hbm [shape: f32[2,16,256], index: 0, kind: input, shape index: {}]   ;;  %s653_s1 = inlined_call_operand.hbm [shape: f32[2,16], index: 1, kind: output, shape index: {}]  }
   0x1   :  { %8 = vsyncpa [#allocation4 + $0x1], 0 }
   0x2   :  { %9 = vsyncpa [#allocation5], 0  ;;  %s499_s6 = smov 0   ;;  %s501_s7 = smov 0  }
   0x3   :  { %s503_s8 = smov 0   ;;  %s505_s9 = smov 0  }
   0x4   :  { %s507_s10 = smov 0   ;;  %s509_s11 = smov 0  }
   0x5 LB: > { %s292_s12 = sadd.s32 4294967295, %s481_s11   ;;  %s24_s13 = sadd.s32 1, %s477_s10  ;;  %s481_s11 = sphi %s509_s11, %s15_s11   ;;  %s477_s10 = sphi %s507_s10, %s663_s10   ;;  %s473_s9 = sphi %s505_s9, %s662_s9   ;;  %s469_s8 = sphi %s503_s8, %s661_s8   ;;  %s465_s7 = sphi %s501_s7, %s660_s7   ;;  %s461_s6 = sphi %s499_s6, %s659_s6  }
   0x6   : > { %p25_p0 = scmp.ge.s32.totalorder %s24_s13, 2  ;;  %s36_s14 = sadd.s32 1, %s469_s8 }
   0x7   : > { %p43_p1 = scmp.ne.s32.totalorder %s469_s8, %s465_s7  ;;  %p44_p2 = scmp.eq.s32.totalorder %s481_s11, 0 }
   0x8   : > { %s665_s13 = smov (%p25_p0, %s24_s13), 0  ;;  %p49_p4 = scmp.ne.s32.totalorder %s465_s7, %s461_s6 }
   0x9   : > { %p535_p3 = por %p44_p2, %p43_p1  ;;  %s32_s16 = ssub.s32 %s477_s10, %s665_s13 }
   0xa   : > { %p50_p5 = scmp.eq.s32.totalorder %s292_s12, 0  ;;  %p34_p6 = scmp.eq.s32.totalorder %s32_s16, 0 }
   0xb   : > { %p315_p8 = scmp.lt.s32.totalorder %s481_s11, 2  ;;  %s99_s19 = sand.u32 1, %s469_s8  }
   0xc   : > { %p544_p7 = por %p50_p5, %p49_p4  ;;  %s296_s20 = sshll.u32 %s477_s10, 7 }
   0xd   : > { %s550_s18 = scalar_select %p34_p6, %s469_s8, %s36_s14  }
   0xe   : > { %s295_s21 = sshll.u32 %s99_s19, 5  ;;  %s557_s24 = scalar_lea.hbm %s652_s0, %s296_s20 }
   0xf   : > { %s103_s25 = scalar_lea.vmem [#allocation3], %s295_s21  ;;  %p561_p9 = pnand %p315_p8, %p535_p3 }
  0x10   : > { %s112_s26 = sshll.u32 %s103_s25, 4  ;;  %s568_s28 = scalar_lea.sflag [#allocation4], %s99_s19  ;;  %s565_s26 = int_to_ptr.vmem [resolvable:$true] %s112_s26 }
  0x11   : > { %s371_s29 = scalar_lea.hbm %s557_s24, 512  ;;  %p373_p12 = pneg %p561_p9 }
  0x12   : > { %p372_p11 = scmp.ne.s32.totalorder %s557_s24, %s371_s29  ;;  %s376_s3 = scalar_lea.hbm %s652_s0, 1024 }
  0x13   : > { %p377_p1 = scmp.lt.u32.totalorder %s557_s24, %s652_s0  ;;  %p378_p2 = scmp.lt.u32.totalorder %s376_s3, %s371_s29 }
  0x14   : > { %p374_p13 = pnand %p373_p12, %p372_p11  ;;  %p380_p4 = scmp.lt.u32.totalorder %s371_s29, %s557_s24 }
  0x15   : > { %p379_p3 = por %p378_p2, %p377_p1 }
  0x16   : > { %p375_p0 = pneg %p374_p13 }
  0x17   : > { %p381_p5 = por %p380_p4, %p379_p3 }
  0x19   : > { %p382_p6 = pnand %p381_p5, %p375_p0 }
  0x1b   : > { %385 = shalt.err (!%p382_p6)
}
  0x1c   : > { %s386_s6 = scalar_lea.vmem %s565_s26, 512  ;;  %s483_s14 = smov [#allocation3]  }
  0x1d   : > { %p387_p8 = scmp.ne.s32.totalorder %s565_s26, %s386_s6  ;;  %s391_s15 = sshll.u32 %s483_s14, 4  ;;  %s392_s15 = int_to_ptr.vmem [resolvable:$false] %s391_s15 }
  0x1e   : > { %s393_s16 = scalar_lea.vmem %s392_s15, 1024  ;;  %p394_p10 = scmp.lt.s32.totalorder %s565_s26, %s392_s15 }
  0x1f   : > { %p389_p11 = pnand %p387_p8, %p373_p12  ;;  %p395_p1 = scmp.lt.s32.totalorder %s393_s16, %s386_s6 }
  0x21   : > { %p390_p13 = pneg %p389_p11  ;;  %p396_p2 = por %p395_p1, %p394_p10 }
  0x23   : > { %p397_p3 = pnand %p396_p2, %p390_p13 }
  0x25   : > { %400 = shalt.err (!%p397_p3)
}
  0x26   : > { %s484_s19 = smov 256   ;;  %s485_s20 = smov 128  }
  0x27   : > { %s486_s21 = smov 8   ;;  %p120_p12 = scmp.lt.s32.totalorder %s481_s11, 3 }
  0x28   : > { %314 = dma.hbm_to_vmem [thread:$0]  (!%p561_p9), %s557_s24, 512, %s565_s26, %s568_s28, %s484_s19, %s485_s20, %s486_s21  }
  0x29   : > { %p657_p0 = scmp.ge.s32.totalorder %s481_s11, 1 }
  0x2b   : > { %p121_p4 = pnand %p657_p0, %p120_p12 }
  0x2c   : > { %s126_s22 = sand.u32 (!%p121_p4), 1, %s465_s7  }
  0x2d   : > { %124 = sbr.rel (%p121_p4) target bundleno = 253 (0xfd), region = 24  ;;  %s298_s23 = sshll.u32 (!%p121_p4), %s126_s22, 5 }
  0x2e   : > { %s127_s25 = scalar_lea.sflag (!%p121_p4), [#allocation4], %s126_s22  ;;  %s130_s29 = scalar_lea.vmem (!%p121_p4), [#allocation3], %s298_s23 }
  0x34   : > { %452 = dma.done.wait (%p544_p7), %s127_s25, 512  }
  0x35   : > { %454 = vsyncadd (%p544_p7), %s127_s25, 4294966784  ;;  %p299_p10 = scmp.ne.s32.totalorder %s473_s9, 0 }
  0x36   : > { %v487_v0 = vmov (!%p299_p10), 0.0  }
  0x37   : > { %148 = sbr.rel (%p299_p10) target bundleno = 62 (0x3e), region = 32  ;;  %149 = vst [vmem:[#allocation2] sm:$0xff] (!%p299_p10), %v487_v0  ;;  %150 = vst [vmem:[#allocation2 + $0x8] sm:$0xff] (!%p299_p10), %v487_v0 }
  0x38   : > { %151 = vst [vmem:[#allocation2 + $0x10] sm:$0xff] (!%p299_p10), %v487_v0  ;;  %152 = vst [vmem:[#allocation2 + $0x18] sm:$0xff] (!%p299_p10), %v487_v0 }
  0x3e PF: > { %v153_v1 = vld [vmem:[%s130_s29] sm:$0xff]  ;;  %v154_v3 = vld [vmem:[%s130_s29 + $0x8] sm:$0xff]  ;;  %v155_v6 = vld [vmem:[%s130_s29 + $0x10] sm:$0xff]  ;;  %p300_p7 = scmp.ne.s32.totalorder %s473_s9, 1 }
  0x3f   : > { %v157_v2 = vld [vmem:[#allocation2] sm:$0xff]  ;;  %v158_v5 = vld [vmem:[#allocation2 + $0x8] sm:$0xff]  ;;  %v159_v7 = vld [vmem:[#allocation2 + $0x10] sm:$0xff]  ;;  %v193_v17 = vlaneseq (!%p300_p7)  ;;  %vm204_vm0 = vcmask (!%p300_p7), 130112   ;;  %vm215_vm1 = vcmask (!%p300_p7), 1041409   ;;  %vm218_vm2 = vcmask (!%p300_p7), 123904  }
  0x40   : > { %v161_v4 = vadd.f32 %v157_v2, %v153_v1  ;;  %v162_v8 = vadd.f32 %v158_v5, %v154_v3  ;;  %v163_v9 = vadd.f32 %v159_v7, %v155_v6  ;;  %v156_v10 = vld [vmem:[%s130_s29 + $0x18] sm:$0xff]  ;;  %172 = sbr.rel (%p300_p7) target bundleno = 228 (0xe4), region = 36 }
  0x41   : > { %v160_v11 = vld [vmem:[#allocation2 + $0x18] sm:$0xff]  ;;  %v194_v18 = vand.u32 (!%p300_p7), 127, %v193_v17  ;;  %v196_v19 = vshrl.u32 (!%p300_p7), %v193_v17, 7 }
  0x42   : > { %165 = vst [vmem:[#allocation2] sm:$0xff] %v161_v4  ;;  %v164_v12 = vadd.f32 %v160_v11, %v156_v10  ;;  %166 = vst [vmem:[#allocation2 + $0x8] sm:$0xff] %v162_v8 }
  0x43   : > { %167 = vst [vmem:[#allocation2 + $0x10] sm:$0xff] %v163_v9  ;;  %v199_v20 = vadd.s32 (!%p300_p7), 4294967288, %v194_v18  ;;  %v197_v23 = vsub.s32 (!%p300_p7), %v194_v18, %v196_v19 }
  0x44   : > { %168 = vst [vmem:[#allocation2 + $0x18] sm:$0xff] %v164_v12 }
  0x45   : > { %v202_v26 = vsub.s32 (!%p300_p7), %v199_v20, %v196_v19 }
  0x49   : > { %v173_v14 = vld [vmem:[#allocation2] sm:$0xff]  ;;  %v174_v16 = vld [vmem:[#allocation2 + $0x8] sm:$0xff] }
  0x4a   : > { %v175_v13 = vld [vmem:[#allocation2 + $0x10] sm:$0xff]  ;;  %177 = vadd.xlane.f32.xlu0 %v173_v14 }
  0x4b   : > { %181 = vadd.xlane.f32.xlu1 %v175_v13  ;;  %v176_v15 = vld [vmem:[#allocation2 + $0x18] sm:$0xff] }
  0x4e   : > { %179 = vadd.xlane.f32.xlu0 %v174_v16 }
  0x4f   : > { %183 = vadd.xlane.f32.xlu1 %v176_v15 }
  0xd7   : > { %v178_v22 = vpop.xlane.xlu0 %177 }
  0xd8   : > { %v182_v21 = vpop.xlane.xlu1 %181  ;;  %v185_v25 = vmul.f32 0.00390625, %v178_v22 }
  0xd9   : > { %v187_v24 = vmul.f32 0.00390625, %v182_v21 }
  0xda   : > { %v198_v32 = vrot.slane %v185_v25, %v197_v23 }
  0xdb   : > { %v180_v28 = vpop.xlane.xlu0 %179  ;;  %v209_v31 = vrot.slane %v187_v24, %v197_v23 }
  0xdc   : > { %v184_v27 = vpop.xlane.xlu1 %183  ;;  %v186_v30 = vmul.f32 0.00390625, %v180_v28 }
  0xdd   : > { %v188_v29 = vmul.f32 0.00390625, %v184_v27 }
  0xde   : > { %v203_v34 = vrot.slane %v186_v30, %v202_v26 }
  0xdf   : > { %v213_v33 = vrot.slane %v188_v29, %v202_v26 }
  0xe0   : > { %v205_v36 = vsel %vm204_vm0, %v203_v34, %v198_v32 }
  0xe1   : > { %v214_v35 = vsel %vm204_vm0, %v213_v33, %v209_v31 }
  0xe2   : > { %v216_v37 = vsel %vm215_vm1, %v214_v35, %v205_v36 }
  0xe3   : > { %219 = vst.msk [vmem:[#allocation6] sm:$0x3] %vm218_vm2, %v216_v37 }
  0xe4 PF: > { %p608_p9 = scmp.eq.s32.totalorder %s292_s12, 1  ;;  %s488_s17 = smov [#allocation6]  }
  0xe5   : > { %s229_s24 = sshll.u32 %s488_s17, 4  ;;  %s230_s24 = int_to_ptr.vmem [resolvable:$true] %s229_s24 }
  0xe6   : > { %s401_s26 = scalar_lea.vmem %s230_s24, 32  ;;  %p408_p11 = scmp.lt.s32.totalorder %s230_s24, %s230_s24 }
  0xe7   : > { %p402_p5 = scmp.ne.s32.totalorder %s230_s24, %s401_s26  ;;  %p409_p13 = scmp.lt.s32.totalorder %s401_s26, %s401_s26 }
  0xe9   : > { %p403_p6 = pnand %p402_p5, %p608_p9  ;;  %p410_p1 = por %p409_p13, %p408_p11 }
  0xeb   : > { %p404_p8 = pneg %p403_p6 }
  0xed   : > { %p411_p2 = pnand %p410_p1, %p404_p8 }
  0xef   : > { %414 = shalt.err (!%p411_p2)
}
  0xf0   : > { %s415_s12 = scalar_lea.hbm %s653_s1, 32 }
  0xf1   : > { %p416_p3 = scmp.ne.s32.totalorder %s653_s1, %s415_s12  ;;  %p421_p4 = scmp.lt.u32.totalorder %s415_s12, %s653_s1 }
  0xf3   : > { %p417_p12 = pnand %p416_p3, %p608_p9 }
  0xf5   : > { %p418_p0 = pneg %p417_p12 }
  0xf7   : > { %p423_p10 = pnand %p421_p4, %p418_p0 }
  0xf9   : > { %426 = shalt.err (!%p423_p10)
}
  0xfa   : > { %308 = dma.vmem_to_hbm [thread:$0]  (%p608_p9), %s230_s24, 32, %s653_s1, [#allocation5]  }
  0xfb   : > { %456 = dma.done.wait (%p608_p9), [#allocation5], 32  }
  0xfc   : > { %458 = vsyncadd (%p608_p9), [#allocation5], 4294967264 }
  0xfd PF: > { %s15_s11 = sadd.s32 1, %s481_s11   ;;  %s659_s6 = smov %s465_s7 }
  0xfe   : > { %p12_p7 = scmp.ge.s32.totalorder %s15_s11, 4   ;;  %s660_s7 = smov %s469_s8 }
  0xff   : > { %s661_s8 = smov %s550_s18  ;;  %s662_s9 = smov %s477_s10 }
 0x100   : > { %s663_s10 = smov %s665_s13  ;;  %14 = sbr.rel (!%p12_p7) target bundleno = 5 (0x5), region = 70 }
 0x107   :  { %242 = vsyncpa [#allocation4], 1 }
 0x108   :  { %244 = vsyncpa [#allocation4 + $0x1], 1 }
 0x109   :  { %245 = vsyncpa [#allocation5], 1 }
 0x10a   :  { %247 = vsyncpa [#allocation5 + $0x1], 1 }

</bundles_post_ra>
